<compile_context>
chip_gen: v5e
topology: v5e:2x2
jax: 0.10.0
libtpu: 0.0.40
codegen_flags: <defaults>
</compile_context>

<pallas_src>
import functools

import jax
import jax.numpy as jnp
from jax.experimental import pallas as pl
from jax.experimental.pallas import tpu as pltpu

MARGIN = 2.0
PAIRWISE_EPS = 1e-6  # F.pairwise_distance default eps (added to the difference)


def _contrastive_loss_kernel(o1_ref, o2_ref, lbl_ref, out_ref, acc_ref, *,
                             total_rows, tile_rows, tiles_per_split, margin,
                             may_need_mask):
    c = pl.program_id(0)          # batch-split index (maps to a TensorCore on v7x)
    i = pl.program_id(1)          # tile index within this split (serial reduction)

    @pl.when(i == 0)
    def _init():
        acc_ref[...] = jnp.zeros_like(acc_ref)

    # Upcast in-kernel: keeps the HBM DMA at the input's native width (bf16-friendly).
    o1 = o1_ref[...].astype(jnp.float32)                       # (TR, D)
    o2 = o2_ref[...].astype(jnp.float32)                       # (TR, D)
    label = lbl_ref[...].astype(jnp.float32)                   # (TR, 1)

    # torch.nn.functional.pairwise_distance: eps added to the difference.
    diff = (o1 - o2) + PAIRWISE_EPS                            # VPU, dense
    dist_sq = jnp.sum(diff * diff, axis=-1, keepdims=True)     # (TR, 1)
    dist = jnp.sqrt(dist_sq)                                   # EUP (separate slot)
    hinge = jnp.maximum(margin - dist, 0.0)                    # clamp(margin - d, 0)

    # (1-label)*d^2 + label*hinge^2  ==  d^2 + label*(hinge^2 - d^2)   (exact, fewer ops)
    per_sample = dist_sq + label * (hinge * hinge - dist_sq)   # (TR, 1)

    if may_need_mask:
        tile_idx = c * tiles_per_split + i                     # UNclamped global tile
        row0 = tile_idx * tile_rows
        is_ragged = row0 + tile_rows > total_rows              # runtime scalar predicate

        @pl.when(jnp.logical_not(is_ragged))
        def _acc_dense():                                      # hot path: no mask work
            acc_ref[...] += per_sample

        @pl.when(is_ragged)
        def _acc_masked():                                     # last / overrun tiles only
            rows = row0 + jax.lax.broadcasted_iota(jnp.int32, per_sample.shape, 0)
            # True select (not a multiply): padded-row NaN/Inf never reaches the sum.
            acc_ref[...] += jnp.where(rows < total_rows, per_sample, 0.0)
    else:
        acc_ref[...] += per_sample

    @pl.when(i == pl.num_programs(1) - 1)
    def _finalize():
        # One cross-sublane reduction per split; write a lane-dense (8,128) output slab
        # (unmasked stores), wrapper adds the per-split partials and divides by B.
        partial = jnp.sum(acc_ref[...], keepdims=True)         # (1, 1)
        out_ref[...] = jnp.broadcast_to(partial[None], out_ref.shape)


def _vmem_capacity_bytes():
    try:
        info = pltpu.get_tpu_info()
        cap = getattr(info, "vmem_capacity_bytes", None)
        if cap:
            return int(cap)
    except Exception:
        pass
    return 64 * 1024 * 1024   # conservative default (v7x per-core VMEM)


def _choose_tile_rows(B, D, itemsize, budget_bytes, max_rows=8192):
    d_pad = ((D + 127) // 128) * 128  # lane padding of the VMEM tile
    # 2 embeddings x 2 pipeline buffers  +  double-buffered lane-padded label column
    # +  the (tile_rows, 1) f32 accumulator (also lane-padded).
    bytes_per_row = 4 * d_pad * itemsize + 2 * 128 * 4 + 128 * 4
    tb = min(max_rows, budget_bytes // max(bytes_per_row, 1))
    tb = max(8, (tb // 8) * 8)               # multiple of 8 when tiling
    if tb >= B:
        return B                             # single tile: block == full array dim
    return tb


def contrastive_loss(output1, output2, label, *, margin=MARGIN, tile_rows=None):
    B, D = output1.shape
    label2d = label.reshape(B, 1)

    phys_vmem = _vmem_capacity_bytes()
    vmem_limit = min(phys_vmem // 2, 64 * 1024 * 1024)   # 64 MiB on 128-MiB chips, 32 on v7x
    if tile_rows is None:
        tile_rows = _choose_tile_rows(B, D, output1.dtype.itemsize, vmem_limit // 2)

    n_tiles = pl.cdiv(B, tile_rows)
    num_split = min(2, n_tiles)                 # leading "parallel" axis -> 2 TCs on v7x
    tiles_per_split = pl.cdiv(n_tiles, num_split)
    last_block = n_tiles - 1
    # Masking is only ever needed if the last tile is ragged or the split is uneven.
    may_need_mask = (B % tile_rows != 0) or (n_tiles % num_split != 0)

    def tile_map(c, i):
        # Clamp so an uneven split never DMAs past the array; clamped duplicate tiles
        # are fully masked in-kernel (row offsets use the unclamped index).
        return (jnp.minimum(c * tiles_per_split + i, last_block), 0)

    kernel = functools.partial(
        _contrastive_loss_kernel,
        total_rows=B, tile_rows=tile_rows, tiles_per_split=tiles_per_split,
        margin=margin, may_need_mask=may_need_mask)

    out = pl.pallas_call(
        kernel,
        out_shape=jax.ShapeDtypeStruct((num_split, 8, 128), jnp.float32),
        grid_spec=pltpu.PrefetchScalarGridSpec(
            num_scalar_prefetch=0,
            grid=(num_split, tiles_per_split),
            in_specs=[
                pl.BlockSpec((tile_rows, D), tile_map),
                pl.BlockSpec((tile_rows, D), tile_map),
                pl.BlockSpec((tile_rows, 1), tile_map),
            ],
            out_specs=pl.BlockSpec((1, 8, 128), lambda c, i: (c, 0, 0)),
            scratch_shapes=[pltpu.VMEM((tile_rows, 1), jnp.float32)],
        ),
        compiler_params=pltpu.CompilerParams(
            dimension_semantics=("parallel", "arbitrary"),
            vmem_limit_bytes=vmem_limit,
        ),
    )(output1, output2, label2d)

    # Sum the per-split partial sums and take the mean over the true batch size.
    return jnp.sum(out[:, 0, 0]) * (1.0 / B)


def contrastive_loss_ref(output1, output2, label, margin=MARGIN):
    # Pure-JAX reference mirroring the PyTorch module.
    diff = output1.astype(jnp.float32) - output2.astype(jnp.float32) + PAIRWISE_EPS
    d = jnp.sqrt(jnp.sum(diff * diff, axis=-1))
    hinge = jnp.maximum(margin - d, 0.0)
    return jnp.mean((1.0 - label) * d**2 + label * hinge**2)


if __name__ == "__main__":
    key = jax.random.PRNGKey(0)
    ks = jax.random.split(key, 9)

    # Small embedding batch from the Siamese network head (single tile, single split).
    B, D = 8, 32
    output1 = jax.random.normal(ks[0], (B, D), dtype=jnp.float32)
    output2 = jax.random.normal(ks[1], (B, D), dtype=jnp.float32)
    label = jax.random.bernoulli(ks[2], p=0.5, shape=(B,)).astype(jnp.float32)

    loss = jax.block_until_ready(contrastive_loss(output1, output2, label))
    ref = contrastive_loss_ref(output1, output2, label)
    assert jnp.allclose(loss, ref, rtol=1e-4, atol=1e-5), (loss, ref)

    # Multi-tile + ragged batch + odd tile count across the 2-way split
    # (exercises index clamping, runtime mask gating and the vector accumulator).
    B2, D2 = 300, 128
    o1b = jax.random.normal(ks[3], (B2, D2), dtype=jnp.float32)
    o2b = jax.random.normal(ks[4], (B2, D2), dtype=jnp.float32)
    lblb = jax.random.bernoulli(ks[5], p=0.5, shape=(B2,)).astype(jnp.float32)

    loss2 = jax.block_until_ready(contrastive_loss(o1b, o2b, lblb, tile_rows=128))
    ref2 = contrastive_loss_ref(o1b, o2b, lblb)
    assert jnp.allclose(loss2, ref2, rtol=1e-4, atol=1e-5), (loss2, ref2)

    # bf16 embeddings: native-width DMA + in-kernel upcast, ragged last tile.
    B3, D3 = 200, 128
    o1c = jax.random.normal(ks[6], (B3, D3), dtype=jnp.bfloat16)
    o2c = jax.random.normal(ks[7], (B3, D3), dtype=jnp.bfloat16)
    lblc = jax.random.bernoulli(ks[8], p=0.5, shape=(B3,)).astype(jnp.float32)

    loss3 = jax.block_until_ready(contrastive_loss(o1c, o2c, lblc, tile_rows=64))
    ref3 = contrastive_loss_ref(o1c, o2c, lblc)
    assert jnp.allclose(loss3, ref3, rtol=1e-3, atol=1e-4), (loss3, ref3)

    print("KERNEL_OK")
</pallas_src>

<mosaic_0001>
module attributes {stable_mosaic.version = 11 : i64} {
  func.func @_contrastive_loss_kernel(%arg0: i32, %arg1: i32, %arg2: memref<8x32xf32, #tpu.memory_space<vmem>>, %arg3: memref<8x32xf32, #tpu.memory_space<vmem>>, %arg4: memref<8x1xf32, #tpu.memory_space<vmem>>, %arg5: memref<1x8x128xf32, #tpu.memory_space<vmem>>, %arg6: memref<8x1xf32, #tpu.memory_space<vmem>>) attributes {dimension_semantics = [#tpu.dimension_semantics<parallel>, #tpu.dimension_semantics<arbitrary>], iteration_bounds = array<i64: 1, 1>, scalar_prefetch = 0 : i64, scratch_operands = 1 : i64, tpu.core_type = #tpu.core_type<tc>, window_params = [{transform_indices = @transform_0, window_bounds = array<i64: 8, 32>}, {transform_indices = @transform_1, window_bounds = array<i64: 8, 32>}, {transform_indices = @transform_2, window_bounds = array<i64: 8, 1>}, {transform_indices = @transform_3, window_bounds = array<i64: 1, 8, 128>}]} {
    %c0_i32 = arith.constant 0 : i32
    %0 = arith.cmpi eq, %arg1, %c0_i32 : i32
    %1 = arith.extui %0 : i1 to i32
    %c0_i32_0 = arith.constant 0 : i32
    %2 = arith.cmpi ne, %1, %c0_i32_0 : i32
    scf.if %2 {
      %cst_15 = arith.constant 0.000000e+00 : f32
      %27 = vector.broadcast %cst_15 : f32 to vector<8x1xf32>
      %c0_16 = arith.constant 0 : index
      %c0_17 = arith.constant 0 : index
      %28 = vector.load %arg6[%c0_16, %c0_17] : memref<8x1xf32, #tpu.memory_space<vmem>>, vector<8x1xf32>
      tpu.vector_store %arg6[%c0_16, %c0_17], %27 {strides = array<i32>} : memref<8x1xf32, #tpu.memory_space<vmem>>, vector<8x1xf32>,
    } else {
    }
    %c0 = arith.constant 0 : index
    %c0_1 = arith.constant 0 : index
    %3 = vector.load %arg2[%c0, %c0_1] : memref<8x32xf32, #tpu.memory_space<vmem>>, vector<8x32xf32>
    %c0_2 = arith.constant 0 : index
    %c0_3 = arith.constant 0 : index
    %4 = vector.load %arg3[%c0_2, %c0_3] : memref<8x32xf32, #tpu.memory_space<vmem>>, vector<8x32xf32>
    %c0_4 = arith.constant 0 : index
    %c0_5 = arith.constant 0 : index
    %5 = vector.load %arg4[%c0_4, %c0_5] : memref<8x1xf32, #tpu.memory_space<vmem>>, vector<8x1xf32>
    %6 = arith.subf %3, %4 : vector<8x32xf32>
    %cst = arith.constant 9.99999997E-7 : f32
    %7 = vector.broadcast %cst : f32 to vector<8x32xf32>
    %8 = arith.addf %6, %7 : vector<8x32xf32>
    %9 = arith.mulf %8, %8 : vector<8x32xf32>
    %cst_6 = arith.constant dense<0.000000e+00> : vector<8xf32>
    %10 = vector.multi_reduction <add>, %9, %cst_6 [1] : vector<8x32xf32> to vector<8xf32>
    %11 = vector.shape_cast %10 : vector<8xf32> to vector<8x1xf32>
    %12 = math.sqrt %11 : vector<8x1xf32>
    %cst_7 = arith.constant 2.000000e+00 : f32
    %13 = vector.broadcast %cst_7 : f32 to vector<8x1xf32>
    %14 = arith.subf %13, %12 : vector<8x1xf32>
    %cst_8 = arith.constant 0.000000e+00 : f32
    %15 = vector.broadcast %cst_8 : f32 to vector<8x1xf32>
    %16 = arith.maximumf %14, %15 : vector<8x1xf32>
    %17 = arith.mulf %16, %16 : vector<8x1xf32>
    %18 = arith.subf %17, %11 : vector<8x1xf32>
    %19 = arith.mulf %5, %18 : vector<8x1xf32>
    %20 = arith.addf %11, %19 : vector<8x1xf32>
    %c0_9 = arith.constant 0 : index
    %c0_10 = arith.constant 0 : index
    %21 = vector.load %arg6[%c0_9, %c0_10] : memref<8x1xf32, #tpu.memory_space<vmem>>, vector<8x1xf32>
    %22 = arith.addf %21, %20 : vector<8x1xf32>
    %c0_11 = arith.constant 0 : index
    %c0_12 = arith.constant 0 : index
    %23 = vector.load %arg6[%c0_11, %c0_12] : memref<8x1xf32, #tpu.memory_space<vmem>>, vector<8x1xf32>
    tpu.vector_store %arg6[%c0_11, %c0_12], %22 {strides = array<i32>} : memref<8x1xf32, #tpu.memory_space<vmem>>, vector<8x1xf32>,
    %c0_i32_13 = arith.constant 0 : i32
    %24 = arith.cmpi eq, %arg1, %c0_i32_13 : i32
    %25 = arith.extui %24 : i1 to i32
    %c0_i32_14 = arith.constant 0 : i32
    %26 = arith.cmpi ne, %25, %c0_i32_14 : i32
    scf.if %26 {
      %c0_15 = arith.constant 0 : index
      %c0_16 = arith.constant 0 : index
      %27 = vector.load %arg6[%c0_15, %c0_16] : memref<8x1xf32, #tpu.memory_space<vmem>>, vector<8x1xf32>
      %28 = vector.shape_cast %27 : vector<8x1xf32> to vector<1x8x1xf32>
      %cst_17 = arith.constant dense<0.000000e+00> : vector<1xf32>
      %29 = vector.multi_reduction <add>, %28, %cst_17 [1, 2] : vector<1x8x1xf32> to vector<1xf32>
      %30 = vector.shape_cast %29 : vector<1xf32> to vector<1x1x1xf32>
      %31 = vector.extract %30[0, 0, 0] : f32 from vector<1x1x1xf32>
      %32 = vector.broadcast %31 : f32 to vector<1x1xf32>
      %33 = vector.shape_cast %32 : vector<1x1xf32> to vector<1x1x1xf32>
      %34 = vector.shape_cast %33 : vector<1x1x1xf32> to vector<1x1x1xf32>
      %35 = vector.broadcast %34 : vector<1x1x1xf32> to vector<1x8x128xf32>
      %c0_18 = arith.constant 0 : index
      %c0_19 = arith.constant 0 : index
      %c0_20 = arith.constant 0 : index
      %36 = vector.load %arg5[%c0_18, %c0_19, %c0_20] : memref<1x8x128xf32, #tpu.memory_space<vmem>>, vector<1x8x128xf32>
      tpu.vector_store %arg5[%c0_18, %c0_19, %c0_20], %35 {strides = array<i32>} : memref<1x8x128xf32, #tpu.memory_space<vmem>>, vector<1x8x128xf32>,
    } else {
    }
    return
  }
  func.func @transform_0(%arg0: i32, %arg1: i32) -> (i32, i32) {
    %c1_i32 = arith.constant 1 : i32
    %0 = arith.muli %arg0, %c1_i32 : i32
    %1 = arith.addi %0, %arg1 : i32
    %c0_i32 = arith.constant 0 : i32
    %2 = arith.minsi %1, %c0_i32 : i32
    %c0_i32_0 = arith.constant 0 : i32
    %c0_i32_1 = arith.constant 0 : i32
    return %2, %c0_i32_0 : i32, i32
  }
  func.func @transform_1(%arg0: i32, %arg1: i32) -> (i32, i32) {
    %c1_i32 = arith.constant 1 : i32
    %0 = arith.muli %arg0, %c1_i32 : i32
    %1 = arith.addi %0, %arg1 : i32
    %c0_i32 = arith.constant 0 : i32
    %2 = arith.minsi %1, %c0_i32 : i32
    %c0_i32_0 = arith.constant 0 : i32
    %c0_i32_1 = arith.constant 0 : i32
    return %2, %c0_i32_0 : i32, i32
  }
  func.func @transform_2(%arg0: i32, %arg1: i32) -> (i32, i32) {
    %c1_i32 = arith.constant 1 : i32
    %0 = arith.muli %arg0, %c1_i32 : i32
    %1 = arith.addi %0, %arg1 : i32
    %c0_i32 = arith.constant 0 : i32
    %2 = arith.minsi %1, %c0_i32 : i32
    %c0_i32_0 = arith.constant 0 : i32
    %c0_i32_1 = arith.constant 0 : i32
    return %2, %c0_i32_0 : i32, i32
  }
  func.func @transform_3(%arg0: i32, %arg1: i32) -> (i32, i32, i32) {
    %c0_i32 = arith.constant 0 : i32
    %c0_i32_0 = arith.constant 0 : i32
    %c0_i32_1 = arith.constant 0 : i32
    return %arg0, %c0_i32, %c0_i32_0 : i32, i32, i32
  }
}

</mosaic_0001>

<bundles_post_ra>
// kernel: tpu_custom_call.1
= control target key start
LH: loop header
LB: loop body
LE: loop exit
PB: predicated region body
PF: predicated region fallthrough
CT: control target
= control target key end

     0   :  { %8 = vsyncpa [#allocation4], 0  ;;  %s273_s0 = inlined_call_operand.vmem [shape: f32[8,32], index: 0, kind: input, shape index: {}]   ;;  %s274_s1 = inlined_call_operand.hbm [shape: f32[8,32], index: 1, kind: input, shape index: {}]   ;;  %s275_s2 = inlined_call_operand.vmem [shape: f32[8,1], index: 2, kind: input, shape index: {}]   ;;  %s276_s3 = inlined_call_operand.hbm [shape: f32[1,8,128], index: 3, kind: output, shape index: {}]  }
   0x1   :  { %9 = vsyncpa [#allocation5], 0  ;;  %s32_s14 = sshll.u32 %s274_s1, 4  ;;  %s235_s15 = smov [#allocation3]   ;;  %s33_s14 = int_to_ptr.hbm [resolvable:$true] %s32_s14 }
   0x2   :  { %s34_s16 = sshll.u32 %s235_s15, 4  ;;  %s35_s16 = int_to_ptr.vmem [resolvable:$true] %s34_s16 }
   0x3   :  { %37 = dma.hbm_to_vmem [thread:$0]  %s33_s14, 128, %s35_s16, [#allocation4]  }
   0x4   :  { %231 = dma.done.wait [#allocation4], 128  }
   0x5   :  { %232 = vsyncadd [#allocation4], 4294967168  ;;  %v97_v0 = vld [vmem:[%s273_s0] sm:$0xff]  ;;  %v98_v1 = vld [vmem:[#allocation3] sm:$0xff]  ;;  %vm103_vm0 = vcmask 261120   ;;  %vm95_vm1 = vcmask 7168  }
   0x6   :  { %v100_v2 = vsub.f32 %v97_v0, %v98_v1  ;;  %v236_v6 = vmov 0.0   ;;  %v99_v21 = vld [vmem:[%s275_s2] sm:$0xff]  ;;  %s237_s2 = smov [#allocation6]   ;;  %s152_s22 = sshll.u32 %s276_s3, 4  ;;  %s153_s22 = int_to_ptr.hbm [resolvable:$true] %s152_s22 }
   0x7   :  { %96 = vst.msk [vmem:[#allocation2] sm:$0xff] %vm95_vm1, %v236_v6  ;;  %s150_s19 = sshll.u32 %s237_s2, 4  ;;  %s151_s19 = int_to_ptr.vmem [resolvable:$true] %s150_s19 }
   0x8   :  { %v101_v3 = vadd.f32 1e-06, %v100_v2 }
   0xa   :  { %v102_v4 = vmul.f32 %v101_v3, %v101_v3 }
   0xc   :  { %v104_v5 = vsel %vm103_vm0, %v102_v4, 0.0 }
   0xd   :  { %105 = vadd.xlane.f32.xlu0 %v104_v5 }
   0xe   :  { %v125_v24 = vld [vmem:[#allocation2] sm:$0xff] }
  0x80   :  { %v106_v7 = vpop.xlane.xlu0 %105 }
  0x81   :  { %181 = vrsqrt.f32 %v106_v7  ;;  %vm114_vm2 = vcmp.eq.f32.partialorder %v106_v7, inf  ;;  %v117_v15 = vand.u32 2147483648, %v106_v7  ;;  %vm116_vm3 = vcmp.eq.f32.partialorder %v106_v7, 0.0 }
  0x87   :  { %v182_v8 = vpop.eup %181 }
  0x88   :  { %v108_v9 = vmul.f32 %v182_v8, %v106_v7 }
  0x8a   :  { %v109_v10 = vmul.f32 %v182_v8, %v108_v9 }
  0x8c   :  { %v110_v11 = vmul.f32 0.5, %v109_v10 }
  0x8e   :  { %v111_v12 = vsub.f32 1.5, %v110_v11 }
  0x90   :  { %v112_v13 = vmul.f32 %v182_v8, %v111_v12 }
  0x92   :  { %v113_v14 = vmul.f32 %v112_v13, %v106_v7 }
  0x94   :  { %v115_v16 = vsel %vm114_vm2, %v106_v7, %v113_v14 }
  0x95   :  { %v118_v17 = vsel %vm116_vm3, %v117_v15, %v115_v16 }
  0x96   :  { %v119_v18 = vsub.f32 2.0, %v118_v17 }
  0x98   :  { %v120_v19 = vmax.f32 %v119_v18, 0.0 }
  0x9a   :  { %v121_v20 = vmul.f32 %v120_v19, %v120_v19 }
  0x9c   :  { %v122_v22 = vsub.f32 %v121_v20, %v106_v7 }
  0x9e   :  { %v123_v23 = vmul.f32 %v122_v22, %v99_v21 }
  0xa0   :  { %v124_v25 = vadd.f32 %v123_v23, %v106_v7 }
  0xa2   :  { %v126_v26 = vadd.f32 %v125_v24, %v124_v25 }
  0xa4   :  { %128 = vst.msk [vmem:[#allocation2] sm:$0xff] %vm95_vm1, %v126_v26 }
  0xab   :  { %v132_v27 = vld [vmem:[#allocation2] sm:$0xff] }
  0xac   :  { %v133_v28 = vsel %vm95_vm1, %v132_v27, 0.0 }
  0xad   :  { %134 = vadd.xlane.f32.xlu0 %v133_v28 }
 0x120   :  { %v135_v29 = vpop.xlane.xlu0 %134 }
 0x121   :  { %v136_v30 = vrot.slane %v135_v29, 4 }
 0x123   :  { %v137_v31 = vadd.f32 %v136_v30, %v135_v29 }
 0x125   :  { %v138_v32 = vrot.slane %v137_v31, 2 }
 0x127   :  { %v139_v33 = vadd.f32 %v138_v32, %v137_v31 }
 0x129   :  { %v140_v34 = vrot.slane %v139_v33, 1 }
 0x12b   :  { %v141_v35 = vadd.f32 %v140_v34, %v139_v33 }
 0x12d   :  { %176 = vpush %v141_v35 }
 0x15e   :  { %s177_s23 = spop %176 }
 0x15f   :  { %v143_v36 = vstv %s177_s23 }
 0x160   :  { %144 = vst [vmem:[#allocation6] sm:$0xff] %v143_v36 }
 0x161   :  { %155 = dma.vmem_to_hbm [thread:$0]  %s151_s19, 128, %s153_s22, [#allocation5]  }
 0x162   :  { %233 = dma.done.wait [#allocation5], 128  }
 0x163   :  { %234 = vsyncadd [#allocation5], 4294967168 }
 0x164   :  { %160 = vsyncpa [#allocation4], 1 }
 0x165   :  { %161 = vsyncpa [#allocation5], 1 }

</bundles_post_ra>
